<compile_context>
chip_gen: v7x
topology: tpu7x:2x2x1
jax: 0.10.0
libtpu: 0.0.40
codegen_flags: <defaults>
</compile_context>

<pallas_src>
import jax
import jax.numpy as jnp
from jax.experimental import pallas as pl
from jax.experimental.pallas import tpu as pltpu


def _round_up(x, m):
    return ((x + m - 1) // m) * m


# ----------------------------- Pallas kernel ------------------------------- #
def _trl_fused_kernel(bias_ref, x_ref, p_ref, wr_ref, o_ref, acc_ref):
    """One (tm, Np) output tile.  Grid = (M tiles, K tiles), K innermost.

    acc_ref (tm, Rp) f32 holds z = x @ P across the K axis; the epilogue at
    k == last applies the resident (Rp, Np) projection Wr and the scalar bias.
    """
    k = pl.program_id(1)

    @pl.when(k == 0)
    def _init():
        acc_ref[...] = jnp.zeros_like(acc_ref)

    acc_ref[...] += jnp.dot(x_ref[...], p_ref[...],
                            preferred_element_type=jnp.float32)

    @pl.when(k == pl.num_programs(1) - 1)
    def _finalize():
        # Second (tiny) GEMM fused in the epilogue; z stays f32 in VMEM.
        y = jnp.dot(acc_ref[...], wr_ref[...],
                    preferred_element_type=jnp.float32)
        o_ref[...] = (y + bias_ref[0]).astype(o_ref.dtype)


def trl_fused_pallas(x_flat, p, wr, bias, *, out_dtype=jnp.float32,
                     tm_cap=256, tk_cap=1024):
    """y = (x_flat @ p) @ wr + bias[0], fused in one pallas_call.

    x_flat: (M, K) bf16, p: (K, R) bf16, wr: (R, N) f32, bias: (1,) f32.
    Operands are zero-padded to MXU/lane-friendly multiples; result sliced
    back to (M, N).
    """
    M, K = x_flat.shape
    K2, R = p.shape
    R2, N = wr.shape
    assert K == K2 and R == R2, (K, K2, R, R2)

    tm = min(tm_cap, _round_up(M, 16))    # 16 = bf16 sublane packing
    tk = min(tk_cap, _round_up(K, 128))   # covers full K at these sizes
    Rp = _round_up(R, 128)                # lane-dense intermediate
    Np = _round_up(N, 128)                # lane-dense output
    Mp = _round_up(M, tm)
    Kp = _round_up(K, tk)

    x_p = jnp.pad(x_flat, ((0, Mp - M), (0, Kp - K)))
    p_p = jnp.pad(p, ((0, Kp - K), (0, Rp - R)))
    wr_p = jnp.pad(wr, ((0, Rp - R), (0, Np - N)))

    grid = (Mp // tm, Kp // tk)

    # VMEM budget derived from the actual tile footprint (double-buffered
    # inputs + resident Wr + f32 scratch + output), with 2x headroom.
    out_isz = jnp.dtype(out_dtype).itemsize
    vmem_bytes = (2 * (tm * tk + tk * Rp) * x_p.dtype.itemsize
                  + 2 * Rp * Np * wr_p.dtype.itemsize
                  + tm * Rp * 4
                  + 2 * tm * Np * out_isz)
    vmem_limit = int(min(32 * 1024 * 1024,
                         max(4 * 1024 * 1024, 2 * vmem_bytes)))

    bytes_accessed = (Mp * Kp * x_p.dtype.itemsize
                      + Kp * Rp * p_p.dtype.itemsize * (Mp // tm)
                      + Rp * Np * wr_p.dtype.itemsize
                      + Mp * Np * out_isz)

    out = pl.pallas_call(
        _trl_fused_kernel,
        out_shape=jax.ShapeDtypeStruct((Mp, Np), out_dtype),
        grid_spec=pltpu.PrefetchScalarGridSpec(
            num_scalar_prefetch=0,
            grid=grid,
            in_specs=[
                pl.BlockSpec(memory_space=pltpu.MemorySpace.SMEM),  # bias (1,)
                pl.BlockSpec((tm, tk), lambda i, k: (i, k)),        # x tile
                pl.BlockSpec((tk, Rp), lambda i, k: (k, 0)),        # P tile
                pl.BlockSpec((Rp, Np), lambda i, k: (0, 0)),        # Wr resident
            ],
            out_specs=pl.BlockSpec((tm, Np), lambda i, k: (i, 0)),
            scratch_shapes=[pltpu.VMEM((tm, Rp), jnp.float32)],     # z = x @ P
        ),
        compiler_params=pltpu.CompilerParams(
            dimension_semantics=("parallel", "arbitrary"),
            vmem_limit_bytes=vmem_limit,
        ),
        cost_estimate=pl.CostEstimate(
            flops=2 * Mp * Kp * Rp + 2 * Mp * Rp * Np,
            transcendentals=0,
            bytes_accessed=bytes_accessed,
        ),
    )(bias.astype(jnp.float32), x_p, p_p, wr_p)

    return out[:M, :N]


# ------------------------------- TRL module -------------------------------- #
def init_trl_params(key, input_size, ranks, output_size):
    """Mirrors TRL.__init__: core, factors ~ U(-0.1, 0.1); bias stays 0."""
    weight_size = list(input_size[1:]) + list(output_size[1:])
    assert len(weight_size) == len(ranks)
    keys = jax.random.split(key, 1 + len(weight_size))
    core = jax.random.uniform(keys[0], tuple(ranks), jnp.float32, -0.1, 0.1)
    factors = [
        jax.random.uniform(keys[1 + i], (in_sz, r), jnp.float32, -0.1, 0.1)
        for i, (in_sz, r) in enumerate(zip(weight_size, ranks))
    ]
    bias = jnp.zeros((1,), jnp.float32)  # never re-initialized in __init__
    return core, factors, bias


def tucker_to_tensor(core, factors):
    # Dense reconstruction — used only for the reference check.
    f0, f1, f2, f3 = factors
    return jnp.einsum("abcd,ia,jb,kc,ld->ijkl", core, f0, f1, f2, f3)


def trl_forward(x, core, factors, bias, *, compute_dtype=jnp.bfloat16):
    """y = inner(x, tucker_to_tensor(core, factors), n_modes=3) + bias."""
    B, C, H, Wd = x.shape
    f0, f1, f2, f3 = factors
    r0, r1, r2, r3 = core.shape
    N = f3.shape[0]
    K = C * H * Wd
    R = r0 * r1 * r2

    # Parameter-side glue (tiny einsums):
    #   P  : Kronecker product of the three input-mode factors, (K, R)
    #   Wr : core contracted with the output factor, (R, N) — kept in f32.
    # TODO(synk): at production C,H,W, contract x mode-by-mode with f0/f1/f2
    #             instead of materializing the Kronecker factor P (K x R).
    P = jnp.einsum("ia,jb,kc->ijkabc", f0, f1, f2).reshape(K, R)
    Wr = jnp.einsum("abcd,ld->abcl", core, f3).reshape(R, N)

    x_flat = x.reshape(B, K).astype(compute_dtype)
    return trl_fused_pallas(x_flat, P.astype(compute_dtype),
                            Wr.astype(jnp.float32), bias,
                            out_dtype=jnp.float32)


# --------------------------------- driver ---------------------------------- #
if __name__ == "__main__":
    # Small NCHW activations + class output, consistent with the module.
    B, C, H, Wd = 2, 4, 16, 16
    N_CLASSES = 16
    input_size = (B, C, H, Wd)
    output_size = (B, N_CLASSES)
    ranks = (3, 4, 4, 5)   # one rank per mode of the weight (C, H, Wd, N)

    key = jax.random.PRNGKey(0)
    kx, kp = jax.random.split(key)
    x = jax.random.normal(kx, input_size, jnp.float32)
    core, factors, bias = init_trl_params(kp, input_size, ranks, output_size)

    fwd = jax.jit(trl_forward)
    y = jax.block_until_ready(fwd(x, core, factors, bias))

    # Pure-JAX dense reference (f32): x_flat @ reshape(tucker_to_tensor) + b.
    Wt = tucker_to_tensor(core, factors)
    y_ref = x.reshape(B, -1) @ Wt.reshape(-1, N_CLASSES) + bias[0]
    assert y.shape == (B, N_CLASSES)
    # bf16 x/P operands + f32 accumulation and f32 intermediate -> ~1% rel err.
    assert jnp.allclose(y, y_ref, atol=3e-5, rtol=3e-2), float(
        jnp.max(jnp.abs(y - y_ref)))

    # Exercise the fused bias epilogue with a non-zero scalar bias.
    bias_nz = jnp.array([0.375], jnp.float32)
    y2 = jax.block_until_ready(fwd(x, core, factors, bias_nz))
    assert jnp.allclose(y2, y_ref + 0.375, atol=3e-5, rtol=3e-2), float(
        jnp.max(jnp.abs(y2 - (y_ref + 0.375))))

    print("KERNEL_OK")
</pallas_src>

<mosaic_0001>
module attributes {stable_mosaic.version = 11 : i64} {
  func.func @_trl_fused_kernel(%arg0: i32, %arg1: i32, %arg2: memref<1xf32, #tpu.memory_space<smem>>, %arg3: memref<16x1024xbf16, #tpu.memory_space<vmem>>, %arg4: memref<1024x128xbf16, #tpu.memory_space<vmem>>, %arg5: memref<128x128xf32, #tpu.memory_space<vmem>>, %arg6: memref<16x128xf32, #tpu.memory_space<vmem>>, %arg7: memref<16x128xf32, #tpu.memory_space<vmem>>) attributes {dimension_semantics = [#tpu.dimension_semantics<parallel>, #tpu.dimension_semantics<arbitrary>], iteration_bounds = array<i64: 1, 1>, scalar_prefetch = 0 : i64, scratch_operands = 1 : i64, tpu.core_type = #tpu.core_type<tc>, window_params = [{transform_indices = @transform_0, window_bounds = array<i64: 1>}, {transform_indices = @transform_1, window_bounds = array<i64: 16, 1024>}, {transform_indices = @transform_2, window_bounds = array<i64: 1024, 128>}, {pipeline_mode = #tpu.pipeline_mode<synchronous>, transform_indices = @transform_3, window_bounds = array<i64: 128, 128>}, {transform_indices = @transform_4, window_bounds = array<i64: 16, 128>}]} {
    %c0_i32 = arith.constant 0 : i32
    %0 = arith.cmpi eq, %arg1, %c0_i32 : i32
    %1 = arith.extui %0 : i1 to i32
    %c0_i32_0 = arith.constant 0 : i32
    %2 = arith.cmpi ne, %1, %c0_i32_0 : i32
    scf.if %2 {
      %cst_10 = arith.constant 0.000000e+00 : f32
      %12 = vector.broadcast %cst_10 : f32 to vector<16x128xf32>
      %c0_11 = arith.constant 0 : index
      %c0_12 = arith.constant 0 : index
      %13 = vector.load %arg7[%c0_11, %c0_12] : memref<16x128xf32, #tpu.memory_space<vmem>>, vector<16x128xf32>
      tpu.vector_store %arg7[%c0_11, %c0_12], %12 {strides = array<i32>} : memref<16x128xf32, #tpu.memory_space<vmem>>, vector<16x128xf32>,
    } else {
    }
    %c0 = arith.constant 0 : index
    %c0_1 = arith.constant 0 : index
    %3 = vector.load %arg7[%c0, %c0_1] : memref<16x128xf32, #tpu.memory_space<vmem>>, vector<16x128xf32>
    %c0_2 = arith.constant 0 : index
    %c0_3 = arith.constant 0 : index
    %4 = vector.load %arg3[%c0_2, %c0_3] : memref<16x1024xbf16, #tpu.memory_space<vmem>>, vector<16x1024xbf16>
    %c0_4 = arith.constant 0 : index
    %c0_5 = arith.constant 0 : index
    %5 = vector.load %arg4[%c0_4, %c0_5] : memref<1024x128xbf16, #tpu.memory_space<vmem>>, vector<1024x128xbf16>
    %cst = arith.constant dense<0.000000e+00> : vector<16x128xf32>
    %6 = tpu.matmul %4, %5, %cst {dimension_numbers = #tpu.dot_dimension_numbers<[1], [0], [0], [1], [0, 0, 1, 1], [], []>} : vector<16x1024xbf16>, vector<1024x128xbf16>, vector<16x128xf32> -> vector<16x128xf32>
    %7 = arith.addf %3, %6 : vector<16x128xf32>
    %c0_6 = arith.constant 0 : index
    %c0_7 = arith.constant 0 : index
    %8 = vector.load %arg7[%c0_6, %c0_7] : memref<16x128xf32, #tpu.memory_space<vmem>>, vector<16x128xf32>
    tpu.vector_store %arg7[%c0_6, %c0_7], %7 {strides = array<i32>} : memref<16x128xf32, #tpu.memory_space<vmem>>, vector<16x128xf32>,
    %c0_i32_8 = arith.constant 0 : i32
    %9 = arith.cmpi eq, %arg1, %c0_i32_8 : i32
    %10 = arith.extui %9 : i1 to i32
    %c0_i32_9 = arith.constant 0 : i32
    %11 = arith.cmpi ne, %10, %c0_i32_9 : i32
    scf.if %11 {
      %c0_10 = arith.constant 0 : index
      %c0_11 = arith.constant 0 : index
      %12 = vector.load %arg7[%c0_10, %c0_11] : memref<16x128xf32, #tpu.memory_space<vmem>>, vector<16x128xf32>
      %c0_12 = arith.constant 0 : index
      %c0_13 = arith.constant 0 : index
      %13 = vector.load %arg5[%c0_12, %c0_13] : memref<128x128xf32, #tpu.memory_space<vmem>>, vector<128x128xf32>
      %cst_14 = arith.constant dense<0.000000e+00> : vector<16x128xf32>
      %14 = tpu.matmul %12, %13, %cst_14 {dimension_numbers = #tpu.dot_dimension_numbers<[1], [0], [0], [1], [0, 0, 1, 1], [], []>} : vector<16x128xf32>, vector<128x128xf32>, vector<16x128xf32> -> vector<16x128xf32>
      %c0_15 = arith.constant 0 : index
      %15 = memref.load %arg2[%c0_15] : memref<1xf32, #tpu.memory_space<smem>>
      %16 = vector.broadcast %15 : f32 to vector<16x128xf32>
      %17 = arith.addf %14, %16 : vector<16x128xf32>
      %c0_16 = arith.constant 0 : index
      %c0_17 = arith.constant 0 : index
      %18 = vector.load %arg6[%c0_16, %c0_17] : memref<16x128xf32, #tpu.memory_space<vmem>>, vector<16x128xf32>
      tpu.vector_store %arg6[%c0_16, %c0_17], %17 {strides = array<i32>} : memref<16x128xf32, #tpu.memory_space<vmem>>, vector<16x128xf32>,
    } else {
    }
    return
  }
  func.func @transform_0(%arg0: i32, %arg1: i32) -> i32 {
    %c0_i32 = arith.constant 0 : i32
    %c0_i32_0 = arith.constant 0 : i32
    return %c0_i32 : i32
  }
  func.func @transform_1(%arg0: i32, %arg1: i32) -> (i32, i32) {
    %c0_i32 = arith.constant 0 : i32
    return %arg0, %arg1 : i32, i32
  }
  func.func @transform_2(%arg0: i32, %arg1: i32) -> (i32, i32) {
    %c0_i32 = arith.constant 0 : i32
    %c0_i32_0 = arith.constant 0 : i32
    return %arg1, %c0_i32 : i32, i32
  }
  func.func @transform_3(%arg0: i32, %arg1: i32) -> (i32, i32) {
    %c0_i32 = arith.constant 0 : i32
    %c0_i32_0 = arith.constant 0 : i32
    %c0_i32_1 = arith.constant 0 : i32
    return %c0_i32, %c0_i32_0 : i32, i32
  }
  func.func @transform_4(%arg0: i32, %arg1: i32) -> (i32, i32) {
    %c0_i32 = arith.constant 0 : i32
    %c0_i32_0 = arith.constant 0 : i32
    return %arg0, %c0_i32 : i32, i32
  }
}

</mosaic_0001>

<bundles_post_ra>
// kernel: trl_forward.1
= control target key start
LH: loop header
LB: loop body
LE: loop exit
PB: predicated region body
PF: predicated region fallthrough
CT: control target
= control target key end

     0   :  { %s1466_s2 = inlined_call_operand.vmem [shape: bf16[1024,128], index: 2, kind: input, shape index: {}]   ;;  %s1467_s1 = inlined_call_operand.vmem [shape: bf16[16,1024], index: 1, kind: input, shape index: {}]   ;;  %s1468_s3 = inlined_call_operand.vmem [shape: f32[128,128], index: 3, kind: input, shape index: {}]   ;;  %s1469_s0 = inlined_call_operand.<no memory space> [shape: f32[1], index: 0, kind: input, shape index: {}]   ;;  %s1470_s4 = inlined_call_operand.vmem [shape: f32[16,128], index: 4, kind: output, shape index: {}]  }
   0x1   :  { %v1104_v0 = vld [vmem:[%s1466_s2 + $0x40] sm:$0xff]   ;;  %v1108_v4 = vld [vmem:[%s1466_s2 + $0x48] sm:$0xff]   ;;  %v1112_v8 = vld [vmem:[%s1466_s2 + $0x50] sm:$0xff]  }
   0x2   :  { %v1105_v1 = vld [vmem:[%s1466_s2 + $0xc0] sm:$0xff]   ;;  %931 = vmatprep.subr.bf16.mxu0 %v1104_v0  ;;  %v1109_v5 = vld [vmem:[%s1466_s2 + $0xc8] sm:$0xff]   ;;  %v1113_v9 = vld [vmem:[%s1466_s2 + $0xd0] sm:$0xff]  }
   0x3   :  { %v1106_v2 = vld [vmem:[%s1466_s2] sm:$0xff]   ;;  %953 = vmatprep.subr.bf16.mxu1 %v1105_v1  ;;  %v1110_v6 = vld [vmem:[%s1466_s2 + $0x8] sm:$0xff]   ;;  %v1114_v10 = vld [vmem:[%s1466_s2 + $0x10] sm:$0xff]  }
   0x4   :  { %v1107_v3 = vld [vmem:[%s1466_s2 + $0x80] sm:$0xff]   ;;  %932 = vmatpush3.bf16.msra.mxu0 %v1106_v2  ;;  %v1111_v7 = vld [vmem:[%s1466_s2 + $0x88] sm:$0xff]   ;;  %v1115_v11 = vld [vmem:[%s1466_s2 + $0x90] sm:$0xff]  }
   0x5   :  { %954 = vmatpush3.bf16.msra.mxu1 %v1107_v3  ;;  %933 = vmatprep.subr.bf16.mxu0 %v1108_v4  ;;  %v1116_v12 = vld [vmem:[%s1466_s2 + $0x58] sm:$0xff]   ;;  %v1120_v16 = vld [vmem:[%s1466_s2 + $0x60] sm:$0xff]   ;;  %v1124_v20 = vld [vmem:[%s1466_s2 + $0x68] sm:$0xff]  }
   0x6   :  { %955 = vmatprep.subr.bf16.mxu1 %v1109_v5  ;;  %v1117_v13 = vld [vmem:[%s1466_s2 + $0xd8] sm:$0xff]   ;;  %v1121_v17 = vld [vmem:[%s1466_s2 + $0xe0] sm:$0xff]   ;;  %v1125_v21 = vld [vmem:[%s1466_s2 + $0xe8] sm:$0xff]  }
   0x7   :  { %v1118_v14 = vld [vmem:[%s1466_s2 + $0x18] sm:$0xff]   ;;  %v1122_v18 = vld [vmem:[%s1466_s2 + $0x20] sm:$0xff]   ;;  %v1126_v22 = vld [vmem:[%s1466_s2 + $0x28] sm:$0xff]  }
   0x8   :  { %934 = vmatpush3.bf16.msra.mxu0 %v1110_v6  ;;  %v1119_v15 = vld [vmem:[%s1466_s2 + $0x98] sm:$0xff]   ;;  %v1123_v19 = vld [vmem:[%s1466_s2 + $0xa0] sm:$0xff]   ;;  %v1127_v23 = vld [vmem:[%s1466_s2 + $0xa8] sm:$0xff]  }
   0x9   :  { %956 = vmatpush3.bf16.msra.mxu1 %v1111_v7  ;;  %935 = vmatprep.subr.bf16.mxu0 %v1112_v8  ;;  %v1128_v24 = vld [vmem:[%s1466_s2 + $0x70] sm:$0xff]   ;;  %v1132_v28 = vld [vmem:[%s1466_s2 + $0x78] sm:$0xff]   ;;  %v27_v32 = vld [vmem:[%s1467_s1] sm:$0xff] }
   0xa   :  { %957 = vmatprep.subr.bf16.mxu1 %v1113_v9  ;;  %v1129_v25 = vld [vmem:[%s1466_s2 + $0xf0] sm:$0xff]   ;;  %v1133_v29 = vld [vmem:[%s1466_s2 + $0xf8] sm:$0xff]   ;;  %v31_v33 = vld [vmem:[%s1467_s1 + $0x20] sm:$0xff] }
   0xb   :  { %v1130_v26 = vld [vmem:[%s1466_s2 + $0x30] sm:$0xff]   ;;  %v1134_v30 = vld [vmem:[%s1466_s2 + $0x38] sm:$0xff]   ;;  %v28_v34 = vld [vmem:[%s1467_s1 + $0x8] sm:$0xff]  ;;  %v859_v35 = vcombine.low %v27_v32, %v31_v33  ;;  %v860_v36 = vcombine.high %v27_v32, %v31_v33 }
   0xc   :  { %936 = vmatpush3.bf16.msra.mxu0 %v1114_v10  ;;  %v1131_v27 = vld [vmem:[%s1466_s2 + $0xb0] sm:$0xff]   ;;  %v1135_v31 = vld [vmem:[%s1466_s2 + $0xb8] sm:$0xff]   ;;  %v32_v37 = vld [vmem:[%s1467_s1 + $0x28] sm:$0xff] }
   0xd   :  { %958 = vmatpush3.bf16.msra.mxu1 %v1115_v11  ;;  %937 = vmatprep.subr.bf16.mxu0 %v1116_v12  ;;  %v861_v38 = vcombine.low %v28_v34, %v32_v37  ;;  %v862_v39 = vcombine.high %v28_v34, %v32_v37  ;;  %v1136_v40 = vld [vmem:[%s1466_s2 + $0x140] sm:$0xff]   ;;  %v1140_v44 = vld [vmem:[%s1466_s2 + $0x148] sm:$0xff]   ;;  %v1144_v48 = vld [vmem:[%s1466_s2 + $0x150] sm:$0xff]  }
   0xe   :  { %959 = vmatprep.subr.bf16.mxu1 %v1117_v13  ;;  %619 = vmatprep.mubr.bf16.mxu0 %v860_v36  ;;  %v1137_v41 = vld [vmem:[%s1466_s2 + $0x1c0] sm:$0xff]   ;;  %v1141_v45 = vld [vmem:[%s1466_s2 + $0x1c8] sm:$0xff]   ;;  %v1145_v49 = vld [vmem:[%s1466_s2 + $0x1d0] sm:$0xff]  }
   0xf   :  { %660 = vmatprep.mubr.bf16.mxu1 %v862_v39  ;;  %v1138_v42 = vld [vmem:[%s1466_s2 + $0x100] sm:$0xff]   ;;  %v1142_v46 = vld [vmem:[%s1466_s2 + $0x108] sm:$0xff]   ;;  %v1146_v50 = vld [vmem:[%s1466_s2 + $0x110] sm:$0xff]  }
  0x10   :  { %938 = vmatpush3.bf16.msra.mxu0 %v1118_v14  ;;  %v1139_v43 = vld [vmem:[%s1466_s2 + $0x180] sm:$0xff]   ;;  %v1143_v47 = vld [vmem:[%s1466_s2 + $0x188] sm:$0xff]   ;;  %v1147_v51 = vld [vmem:[%s1466_s2 + $0x190] sm:$0xff]  }
  0x11   :  { %960 = vmatpush3.bf16.msra.mxu1 %v1119_v15  ;;  %939 = vmatprep.subr.bf16.mxu0 %v1120_v16  ;;  %v1148_v52 = vld [vmem:[%s1466_s2 + $0x158] sm:$0xff]   ;;  %v1152_v56 = vld [vmem:[%s1466_s2 + $0x160] sm:$0xff]   ;;  %v1156_v60 = vld [vmem:[%s1466_s2 + $0x168] sm:$0xff]  }
  0x12   :  { %961 = vmatprep.subr.bf16.mxu1 %v1121_v17  ;;  %v1149_v53 = vld [vmem:[%s1466_s2 + $0x1d8] sm:$0xff]   ;;  %v1153_v57 = vld [vmem:[%s1466_s2 + $0x1e0] sm:$0xff]   ;;  %v1157_v61 = vld [vmem:[%s1466_s2 + $0x1e8] sm:$0xff]  }
  0x13   :  { %v1150_v54 = vld [vmem:[%s1466_s2 + $0x118] sm:$0xff]   ;;  %v1154_v58 = vld [vmem:[%s1466_s2 + $0x120] sm:$0xff]   ;;  %v1158_v62 = vld [vmem:[%s1466_s2 + $0x128] sm:$0xff]  }
  0x14   :  { %940 = vmatpush3.bf16.msra.mxu0 %v1122_v18  ;;  %v1151_v55 = vld [vmem:[%s1466_s2 + $0x198] sm:$0xff]   ;;  %v1155_v59 = vld [vmem:[%s1466_s2 + $0x1a0] sm:$0xff]   ;;  %v1159_v63 = vld [vmem:[%s1466_s2 + $0x1a8] sm:$0xff]  }
  0x15   :  { %962 = vmatpush3.bf16.msra.mxu1 %v1123_v19  ;;  %941 = vmatprep.subr.bf16.mxu0 %v1124_v20  ;;  %v1160_v0 = vld [vmem:[%s1466_s2 + $0x170] sm:$0xff]   ;;  %v1164_v4 = vld [vmem:[%s1466_s2 + $0x178] sm:$0xff]   ;;  %v760_v16 = vld [vmem:[%s1468_s3] sm:$0xff] }
  0x16   :  { %963 = vmatprep.subr.bf16.mxu1 %v1125_v21  ;;  %v1161_v1 = vld [vmem:[%s1466_s2 + $0x1f0] sm:$0xff]   ;;  %v1165_v5 = vld [vmem:[%s1466_s2 + $0x1f8] sm:$0xff]   ;;  %v761_v17 = vld [vmem:[%s1468_s3 + $0x8] sm:$0xff] }
  0x17   :  { %v1162_v2 = vld [vmem:[%s1466_s2 + $0x130] sm:$0xff]   ;;  %v1166_v6 = vld [vmem:[%s1466_s2 + $0x138] sm:$0xff]   ;;  %v1072_v19 = vpack.c.bf16 %v761_v17, %v760_v16  ;;  %v772_v34 = vld [vmem:[%s1468_s3 + $0x60] sm:$0xff] }
  0x18   :  { %942 = vmatpush3.bf16.msra.mxu0 %v1126_v22  ;;  %v1163_v3 = vld [vmem:[%s1466_s2 + $0x1b0] sm:$0xff]   ;;  %v1167_v7 = vld [vmem:[%s1466_s2 + $0x1b8] sm:$0xff]   ;;  %v764_v22 = vld [vmem:[%s1468_s3 + $0x20] sm:$0xff] }
  0x19   :  { %964 = vmatpush3.bf16.msra.mxu1 %v1127_v23  ;;  %943 = vmatprep.subr.bf16.mxu0 %v1128_v24  ;;  %v29_v8 = vld [vmem:[%s1467_s1 + $0x10] sm:$0xff]  ;;  %v30_v12 = vld [vmem:[%s1467_s1 + $0x18] sm:$0xff]  ;;  %v765_v23 = vld [vmem:[%s1468_s3 + $0x28] sm:$0xff] }
  0x1a   :  { %965 = vmatprep.subr.bf16.mxu1 %v1129_v25  ;;  %v33_v9 = vld [vmem:[%s1467_s1 + $0x30] sm:$0xff]  ;;  %v34_v13 = vld [vmem:[%s1467_s1 + $0x38] sm:$0xff]  ;;  %v1080_v24 = vpack.c.bf16 %v765_v23, %v764_v22 }
  0x1b   :  { %v863_v10 = vcombine.low %v29_v8, %v33_v9  ;;  %v864_v11 = vcombine.high %v29_v8, %v33_v9  ;;  %v865_v14 = vcombine.low %v30_v12, %v34_v13  ;;  %v866_v15 = vcombine.high %v30_v12, %v34_v13  ;;  %v762_v18 = vld [vmem:[%s1468_s3 + $0x10] sm:$0xff]  ;;  %v763_v20 = vld [vmem:[%s1468_s3 + $0x18] sm:$0xff] }
  0x1c   :  { %944 = vmatpush3.bf16.msra.mxu0 %v1130_v26  ;;  %v1076_v21 = vpack.c.bf16 %v763_v20, %v762_v18  ;;  %v766_v25 = vld [vmem:[%s1468_s3 + $0x30] sm:$0xff]  ;;  %v767_v26 = vld [vmem:[%s1468_s3 + $0x38] sm:$0xff] }
  0x1d   :  { %966 = vmatpush3.bf16.msra.mxu1 %v1131_v27  ;;  %945 = vmatprep.subr.bf16.mxu0 %v1132_v28  ;;  %v1084_v27 = vpack.c.bf16 %v767_v26, %v766_v25  ;;  %v768_v28 = vld [vmem:[%s1468_s3 + $0x40] sm:$0xff]  ;;  %v771_v32 = vld [vmem:[%s1468_s3 + $0x58] sm:$0xff]  ;;  %v774_v37 = vld [vmem:[%s1468_s3 + $0x70] sm:$0xff] }
  0x1e   :  { %967 = vmatprep.subr.bf16.mxu1 %v1133_v29  ;;  %v769_v29 = vld [vmem:[%s1468_s3 + $0x48] sm:$0xff] }
  0x20   :  { %946 = vmatpush3.bf16.msra.mxu0 %v1134_v30  ;;  %v1088_v30 = vpack.c.bf16 %v769_v29, %v768_v28 }
  0x21   :  { %968 = vmatpush3.bf16.msra.mxu1 %v1135_v31  ;;  %975 = vmatprep.subr.bf16.mxu0 %v1136_v40  ;;  %v770_v31 = vld [vmem:[%s1468_s3 + $0x50] sm:$0xff] }
  0x22   :  { %997 = vmatprep.subr.bf16.mxu1 %v1137_v41  ;;  %v1092_v33 = vpack.c.bf16 %v771_v32, %v770_v31 }
  0x23   :  { %620 = vmatmul.mubr.bf16.vlgmr.msra.gmra.mrb[0].mxu0 %v859_v35  ;;  %v773_v35 = vld [vmem:[%s1468_s3 + $0x68] sm:$0xff] }
  0x24   :  { %661 = vmatmul.mubr.bf16.vlgmr.msra.gmra.mrb[0].mxu1 %v861_v38  ;;  %976 = vmatpush3.bf16.msra.mxu0 %v1138_v42  ;;  %v1096_v36 = vpack.c.bf16 %v773_v35, %v772_v34  ;;  %v775_v38 = vld [vmem:[%s1468_s3 + $0x78] sm:$0xff] }
  0x25   :  { %998 = vmatpush3.bf16.msra.mxu1 %v1139_v43  ;;  %977 = vmatprep.subr.bf16.mxu0 %v1140_v44  ;;  %v1100_v39 = vpack.c.bf16 %v775_v38, %v774_v37 }
  0x26   :  { %999 = vmatprep.subr.bf16.mxu1 %v1141_v45  ;;  %701 = vmatprep.mubr.bf16.mxu0 %v864_v11 }
  0x27   :  { %742 = vmatprep.mubr.bf16.mxu1 %v866_v15 }
  0x28   :  { %978 = vmatpush3.bf16.msra.mxu0 %v1142_v46 }
  0x29   :  { %1000 = vmatpush3.bf16.msra.mxu1 %v1143_v47  ;;  %979 = vmatprep.subr.bf16.mxu0 %v1144_v48 }
  0x2a   :  { %1001 = vmatprep.subr.bf16.mxu1 %v1145_v49 }
  0x2c   :  { %980 = vmatpush3.bf16.msra.mxu0 %v1146_v50 }
  0x2d   :  { %1002 = vmatpush3.bf16.msra.mxu1 %v1147_v51  ;;  %981 = vmatprep.subr.bf16.mxu0 %v1148_v52 }
  0x2e   :  { %1003 = vmatprep.subr.bf16.mxu1 %v1149_v53 }
  0x30   :  { %982 = vmatpush3.bf16.msra.mxu0 %v1150_v54 }
  0x31   :  { %1004 = vmatpush3.bf16.msra.mxu1 %v1151_v55  ;;  %983 = vmatprep.subr.bf16.mxu0 %v1152_v56 }
  0x32   :  { %1005 = vmatprep.subr.bf16.mxu1 %v1153_v57 }
  0x34   :  { %984 = vmatpush3.bf16.msra.mxu0 %v1154_v58 }
  0x35   :  { %1006 = vmatpush3.bf16.msra.mxu1 %v1155_v59  ;;  %985 = vmatprep.subr.bf16.mxu0 %v1156_v60 }
  0x36   :  { %1007 = vmatprep.subr.bf16.mxu1 %v1157_v61 }
  0x38   :  { %986 = vmatpush3.bf16.msra.mxu0 %v1158_v62 }
  0x39   :  { %1008 = vmatpush3.bf16.msra.mxu1 %v1159_v63  ;;  %987 = vmatprep.subr.bf16.mxu0 %v1160_v0 }
  0x3a   :  { %1009 = vmatprep.subr.bf16.mxu1 %v1161_v1 }
  0x3c   :  { %988 = vmatpush3.bf16.msra.mxu0 %v1162_v2 }
  0x3d   :  { %1010 = vmatpush3.bf16.msra.mxu1 %v1163_v3  ;;  %989 = vmatprep.subr.bf16.mxu0 %v1164_v4 }
  0x3e   :  { %1011 = vmatprep.subr.bf16.mxu1 %v1165_v5 }
  0x40   :  { %990 = vmatpush3.bf16.msra.mxu0 %v1166_v6  ;;  %v777_v6 = vstv %s1469_s0 }
  0x41   :  { %1012 = vmatpush3.bf16.msra.mxu1 %v1167_v7  ;;  %1073 = vmatprep.subr.bf16.mxu0 %v1072_v19 }
  0x43   :  { %702 = vmatmul.mubr.bf16.vlgmr.msra.gmra.mrb[4].mxu0 %v863_v10 }
  0x44   :  { %743 = vmatmul.mubr.bf16.vlgmr.msra.gmra.mrb[4].mxu1 %v865_v14  ;;  %1075 = vmatpush3.bf16.msra.mxu0 %v1072_v19 }
  0x45   :  { %1077 = vmatprep.subr.bf16.mxu0 %v1076_v21 }
  0x48   :  { %1079 = vmatpush3.bf16.msra.mxu0 %v1076_v21 }
  0x49   :  { %1081 = vmatprep.subr.bf16.mxu0 %v1080_v24 }
  0x4c   :  { %1083 = vmatpush3.bf16.msra.mxu0 %v1080_v24 }
  0x4d   :  { %1085 = vmatprep.subr.bf16.mxu0 %v1084_v27 }
  0x50   :  { %1087 = vmatpush3.bf16.msra.mxu0 %v1084_v27 }
  0x51   :  { %1089 = vmatprep.subr.bf16.mxu0 %v1088_v30 }
  0x54   :  { %1091 = vmatpush3.bf16.msra.mxu0 %v1088_v30 }
  0x55   :  { %1093 = vmatprep.subr.bf16.mxu0 %v1092_v33 }
  0x58   :  { %1095 = vmatpush3.bf16.msra.mxu0 %v1092_v33 }
  0x59   :  { %1097 = vmatprep.subr.bf16.mxu0 %v1096_v36 }
  0x5c   :  { %1099 = vmatpush3.bf16.msra.mxu0 %v1096_v36 }
  0x5d   :  { %1101 = vmatprep.subr.bf16.mxu0 %v1100_v39 }
  0x60   :  { %1103 = vmatpush3.bf16.msra.mxu0 %v1100_v39 }
  0xf6   :  { %v947_v40 = vpop.f32.mrb[0].mxu0 }
  0xf7   :  { %v969_v41 = vpop.f32.mrb[0].mxu1  ;;  %v948_v42 = vpop.f32.mrb[1].mxu0 }
  0xf8   :  { %v949_v43 = vadd.f32 %v948_v42, %v947_v40  ;;  %v970_v44 = vpop.f32.mrb[1].mxu1  ;;  %v950_v45 = vpop.f32.mrb[2].mxu0 }
  0xf9   :  { %v971_v46 = vadd.f32 %v970_v44, %v969_v41  ;;  %v972_v47 = vpop.f32.mrb[2].mxu1  ;;  %v951_v48 = vpop.f32.mrb[3].mxu0 }
  0xfa   :  { %v952_v49 = vadd.f32 %v951_v48, %v950_v45  ;;  %v973_v50 = vpop.f32.mrb[3].mxu1 }
  0xfb   :  { %v663_v51 = vadd.f32 %v971_v46, %v949_v43  ;;  %v974_v52 = vadd.f32 %v973_v50, %v972_v47 }
  0xfd   :  { %v666_v53 = vadd.f32 %v974_v52, %v952_v49 }
 0x116   :  { %v991_v54 = vpop.f32.mrb[4].mxu0 }
 0x117   :  { %v1013_v55 = vpop.f32.mrb[4].mxu1  ;;  %v992_v56 = vpop.f32.mrb[5].mxu0 }
 0x118   :  { %v993_v57 = vadd.f32 %v992_v56, %v991_v54  ;;  %v1014_v58 = vpop.f32.mrb[5].mxu1  ;;  %v994_v59 = vpop.f32.mrb[6].mxu0 }
 0x119   :  { %v1015_v60 = vadd.f32 %v1014_v58, %v1013_v55  ;;  %v1016_v61 = vpop.f32.mrb[6].mxu1  ;;  %v995_v62 = vpop.f32.mrb[7].mxu0 }
 0x11a   :  { %v704_v63 = vadd.f32 %v993_v57, %v663_v51  ;;  %v996_v0 = vadd.f32 %v995_v62, %v994_v59  ;;  %v1017_v1 = vpop.f32.mrb[7].mxu1 }
 0x11b   :  { %v1018_v2 = vadd.f32 %v1017_v1, %v1016_v61 }
 0x11c   :  { %v745_v3 = vadd.f32 %v1015_v60, %v704_v63  ;;  %v707_v4 = vadd.f32 %v996_v0, %v666_v53 }
 0x11e   :  { %v748_v5 = vadd.f32 %v1018_v2, %v707_v4  ;;  %1069 = vmatprep.mubr.f32.mxu0 %v745_v3 }
 0x120   :  { %1070 = vmatmul.mubr.f32.vlgmr.msra.gmra.mrb[8].mxu0 %v748_v5 }
 0x1f3   :  { %v1071_v7 = vpop.f32.mrb[8].mxu0 }
 0x1f4   :  { %v850_v8 = vadd.f32 %v1071_v7, %v777_v6  ;;  %v844_v9 = vpop.f32.mrb[9].mxu0 }
 0x1f5   :  { %v845_v10 = vadd.f32 %v844_v9, %v777_v6 }
 0x1f6   :  { %854 = vst [vmem:[%s1470_s4 + $0x8] sm:$0xff] %v850_v8 }
 0x1f7   :  { %853 = vst [vmem:[%s1470_s4] sm:$0xff] %v845_v10 }

</bundles_post_ra>
